<compile_context>
chip_gen: v7x
topology: tpu7x:2x2x1
jax: 0.10.0
libtpu: 0.0.40
codegen_flags: <defaults>
</compile_context>

<pallas_src>
import functools

import jax
import jax.numpy as jnp
from jax.experimental import pallas as pl
from jax.experimental.pallas import tpu as pltpu

NEG_SLOPE = -0.8  # nn.LeakyReLU(-0.8)


def _leaky_relu(h):
    # PyTorch LeakyReLU: x for x >= 0, slope * x otherwise.
    return jnp.where(h >= 0, h, NEG_SLOPE * h)


def _round_up(n, m):
    return ((n + m - 1) // m) * m


def _permequi_mean_kernel(xT_ref, gw_ref, gb_ref, lw_ref, lb_ref, o_ref,
                          *, gamma_dims, lambda_dims):
    """All activations are transposed: (features, TILE_B), batch on lanes."""
    x = xT_ref[...].astype(jnp.float32)          # (in_dim, TILE_B)
    gw = gw_ref[...]                             # (L, GMAX_OUT, GMAX_IN)  W^T, zero-padded
    gb = gb_ref[...]                             # (GMAX_OUT, L)
    lw = lw_ref[...]                             # (L, LMAX_OUT, LMAX_IN)
    lb = lb_ref[...]                             # (LMAX_OUT, L)

    # x.mean(1, keepdim=True) -> mean over the feature axis (sublane reduce).
    xm = jnp.mean(x, axis=0, keepdims=True)      # (1, TILE_B)

    # Gamma MLP on x (transposed layout: h_{l+1} = W_l^T @ h_l + b_l).
    n_g = len(gamma_dims) - 1
    h = x
    for l in range(n_g):
        fi, fo = gamma_dims[l], gamma_dims[l + 1]
        w = gw[l, :fo, :fi]                      # (fo, fi) = W^T (static slices)
        b = gb[:fo, l:l + 1]                     # (fo, 1)
        h = jnp.dot(w, h, preferred_element_type=jnp.float32) + b
        if l < n_g - 1:
            h = _leaky_relu(h)
    gx = h                                       # (out_dim, TILE_B)

    # Lambda MLP on xm. First layer has fan_in == 1: use a VPU broadcast
    # multiply-add instead of a K=1 MXU matmul.
    n_l = len(lambda_dims) - 1
    fo0 = lambda_dims[1]
    hl = lw[0, :fo0, 0:1] * xm + lb[:fo0, 0:1]   # (fo0, TILE_B)
    hl = _leaky_relu(hl)
    for l in range(1, n_l):
        fi, fo = lambda_dims[l], lambda_dims[l + 1]
        w = lw[l, :fo, :fi]
        b = lb[:fo, l:l + 1]
        hl = jnp.dot(w, hl, preferred_element_type=jnp.float32) + b
        if l < n_l - 1:
            hl = _leaky_relu(hl)

    o_ref[...] = jnp.tanh(gx - hl).astype(o_ref.dtype)


def _pack_mlp(params):
    """Pack [(W(fan_in,fan_out), b(1,fan_out)), ...] into padded W^T / b slabs."""
    n = len(params)
    max_in = max(w.shape[0] for w, _ in params)
    max_out = max(w.shape[1] for w, _ in params)
    wslab = jnp.zeros((n, max_out, max_in), jnp.float32)
    bslab = jnp.zeros((max_out, n), jnp.float32)
    for l, (w, b) in enumerate(params):
        fi, fo = w.shape
        wslab = wslab.at[l, :fo, :fi].set(w.T.astype(jnp.float32))
        bslab = bslab.at[:fo, l].set(b.reshape(-1).astype(jnp.float32))
    return wslab, bslab


def perm_equi_mean(x, gamma_params, lambda_params, *, tile_b=512):
    """x: (B, in_dim). gamma_params/lambda_params: list of (W(fan_in,fan_out), b(1,fan_out))."""
    B, in_dim = x.shape
    out_dim = gamma_params[-1][0].shape[1]
    gamma_dims = tuple([in_dim] + [w.shape[1] for w, _ in gamma_params])
    lambda_dims = tuple([1] + [w.shape[1] for w, _ in lambda_params])

    gw, gb = _pack_mlp(gamma_params)
    lw, lb = _pack_mlp(lambda_params)

    # Batch goes on the lane axis: pick a 128-aligned tile and zero-pad B up to it.
    tile_b = max(128, min(int(tile_b), _round_up(B, 128)))
    b_pad = _round_up(B, tile_b)
    xT = x.T                                     # (in_dim, B)
    if b_pad != B:
        xT = jnp.pad(xT, ((0, 0), (0, b_pad - B)))

    kernel = functools.partial(_permequi_mean_kernel,
                               gamma_dims=gamma_dims,
                               lambda_dims=lambda_dims)

    outT = pl.pallas_call(
        kernel,
        out_shape=jax.ShapeDtypeStruct((out_dim, b_pad), x.dtype),
        grid=(b_pad // tile_b,),
        in_specs=[
            pl.BlockSpec((in_dim, tile_b), lambda i: (0, i)),   # streamed x tile
            pl.BlockSpec(gw.shape, lambda i: (0, 0, 0)),        # weight slabs:
            pl.BlockSpec(gb.shape, lambda i: (0, 0)),           # constant index_map ->
            pl.BlockSpec(lw.shape, lambda i: (0, 0, 0)),        # DMA'd once, VMEM-resident
            pl.BlockSpec(lb.shape, lambda i: (0, 0)),
        ],
        out_specs=pl.BlockSpec((out_dim, tile_b), lambda i: (0, i)),
        compiler_params=pltpu.CompilerParams(
            dimension_semantics=("parallel",)),
    )(xT, gw, gb, lw, lb)

    return outT[:, :B].T                          # back to (B, out_dim)


def init_linear(key, fan_in, fan_out):
    """Deterministic PyTorch-Linear-style init (uniform +/- 1/sqrt(fan_in))."""
    kw, kb = jax.random.split(key)
    bound = 1.0 / float(fan_in) ** 0.5
    w = jax.random.uniform(kw, (fan_in, fan_out), jnp.float32, -bound, bound)
    b = jax.random.uniform(kb, (1, fan_out), jnp.float32, -bound, bound)
    return w, b


if __name__ == "__main__":
    # Small shapes: B not a multiple of the tile to exercise padding/slicing.
    B, in_dim, out_dim = 300, 16, 12

    key = jax.random.PRNGKey(0)
    keys = jax.random.split(key, 11)

    gamma_dims = [in_dim, 10, 20, 15, 10, out_dim]   # nn.Linear(in_dim,10)...(10,out_dim)
    lambda_dims = [1, 10, 20, 15, 10, out_dim]       # nn.Linear(1,10)...(10,out_dim)

    gamma_params = [init_linear(keys[i], gamma_dims[i], gamma_dims[i + 1])
                    for i in range(5)]
    lambda_params = [init_linear(keys[5 + i], lambda_dims[i], lambda_dims[i + 1])
                     for i in range(5)]

    x = jax.random.normal(keys[10], (B, in_dim), jnp.float32)

    out = perm_equi_mean(x, gamma_params, lambda_params, tile_b=128)
    out = jax.block_until_ready(out)

    # Pure-JAX reference (matches the PyTorch module's forward).
    def ref_mlp(h, params):
        for i, (w, b) in enumerate(params):
            h = h @ w + b
            if i < len(params) - 1:
                h = jnp.where(h >= 0, h, NEG_SLOPE * h)
        return h

    xm = jnp.mean(x, axis=1, keepdims=True)
    ref = jnp.tanh(ref_mlp(x, gamma_params) - ref_mlp(xm, lambda_params))

    assert out.shape == (B, out_dim)
    assert jnp.allclose(out, ref, atol=1e-5, rtol=1e-5)

    print("KERNEL_OK")
</pallas_src>

<mosaic_0001>
module attributes {stable_mosaic.version = 11 : i64} {
  func.func @_permequi_mean_kernel(%arg0: i32, %arg1: memref<16x128xf32, #tpu.memory_space<vmem>>, %arg2: memref<5x20x20xf32, #tpu.memory_space<vmem>>, %arg3: memref<20x5xf32, #tpu.memory_space<vmem>>, %arg4: memref<5x20x20xf32, #tpu.memory_space<vmem>>, %arg5: memref<20x5xf32, #tpu.memory_space<vmem>>, %arg6: memref<12x128xf32, #tpu.memory_space<vmem>>) attributes {dimension_semantics = [#tpu.dimension_semantics<parallel>], iteration_bounds = array<i64: 3>, scalar_prefetch = 0 : i64, scratch_operands = 0 : i64, tpu.core_type = #tpu.core_type<tc>, window_params = [{transform_indices = @transform_0, window_bounds = array<i64: 16, 128>}, {pipeline_mode = #tpu.pipeline_mode<synchronous>, transform_indices = @transform_1, window_bounds = array<i64: 5, 20, 20>}, {pipeline_mode = #tpu.pipeline_mode<synchronous>, transform_indices = @transform_2, window_bounds = array<i64: 20, 5>}, {pipeline_mode = #tpu.pipeline_mode<synchronous>, transform_indices = @transform_3, window_bounds = array<i64: 5, 20, 20>}, {pipeline_mode = #tpu.pipeline_mode<synchronous>, transform_indices = @transform_4, window_bounds = array<i64: 20, 5>}, {transform_indices = @transform_5, window_bounds = array<i64: 12, 128>}]} {
    %c0 = arith.constant 0 : index
    %c0_0 = arith.constant 0 : index
    %0 = vector.load %arg1[%c0, %c0_0] : memref<16x128xf32, #tpu.memory_space<vmem>>, vector<16x128xf32>
    %c0_1 = arith.constant 0 : index
    %c0_2 = arith.constant 0 : index
    %c0_3 = arith.constant 0 : index
    %1 = vector.load %arg2[%c0_1, %c0_2, %c0_3] : memref<5x20x20xf32, #tpu.memory_space<vmem>>, vector<5x20x20xf32>
    %c0_4 = arith.constant 0 : index
    %c0_5 = arith.constant 0 : index
    %2 = vector.load %arg3[%c0_4, %c0_5] : memref<20x5xf32, #tpu.memory_space<vmem>>, vector<20x5xf32>
    %c0_6 = arith.constant 0 : index
    %c0_7 = arith.constant 0 : index
    %c0_8 = arith.constant 0 : index
    %3 = vector.load %arg4[%c0_6, %c0_7, %c0_8] : memref<5x20x20xf32, #tpu.memory_space<vmem>>, vector<5x20x20xf32>
    %c0_9 = arith.constant 0 : index
    %c0_10 = arith.constant 0 : index
    %4 = vector.load %arg5[%c0_9, %c0_10] : memref<20x5xf32, #tpu.memory_space<vmem>>, vector<20x5xf32>
    %cst = arith.constant dense<0.000000e+00> : vector<128xf32>
    %5 = vector.multi_reduction <add>, %0, %cst [0] : vector<16x128xf32> to vector<128xf32>
    %6 = vector.shape_cast %5 : vector<128xf32> to vector<1x128xf32>
    %cst_11 = arith.constant 1.600000e+01 : f32
    %7 = vector.broadcast %cst_11 : f32 to vector<1x128xf32>
    %8 = arith.divf %6, %7 : vector<1x128xf32>
    %9 = vector.extract_strided_slice %1 {offsets = [0, 0, 0], sizes = [1, 10, 16], strides = [1, 1, 1]} : vector<5x20x20xf32> to vector<1x10x16xf32>
    %10 = vector.shape_cast %9 : vector<1x10x16xf32> to vector<10x16xf32>
    %11 = vector.extract_strided_slice %2 {offsets = [0, 0], sizes = [10, 1], strides = [1, 1]} : vector<20x5xf32> to vector<10x1xf32>
    %cst_12 = arith.constant dense<0.000000e+00> : vector<10x128xf32>
    %12 = tpu.matmul %10, %0, %cst_12 {dimension_numbers = #tpu.dot_dimension_numbers<[1], [0], [0], [1], [0, 0, 1, 1], [], []>} : vector<10x16xf32>, vector<16x128xf32>, vector<10x128xf32> -> vector<10x128xf32>
    %13 = vector.broadcast %11 : vector<10x1xf32> to vector<10x128xf32>
    %14 = arith.addf %12, %13 : vector<10x128xf32>
    %cst_13 = arith.constant 0.000000e+00 : f32
    %15 = vector.broadcast %cst_13 : f32 to vector<10x128xf32>
    %16 = arith.cmpf oge, %14, %15 : vector<10x128xf32>
    %cst_14 = arith.constant -8.000000e-01 : f32
    %17 = vector.broadcast %cst_14 : f32 to vector<10x128xf32>
    %18 = arith.mulf %17, %14 : vector<10x128xf32>
    %19 = arith.select %16, %14, %18 : vector<10x128xi1>, vector<10x128xf32>
    %20 = vector.extract_strided_slice %1 {offsets = [1, 0, 0], sizes = [1, 20, 10], strides = [1, 1, 1]} : vector<5x20x20xf32> to vector<1x20x10xf32>
    %21 = vector.shape_cast %20 : vector<1x20x10xf32> to vector<20x10xf32>
    %22 = vector.extract_strided_slice %2 {offsets = [0, 1], sizes = [20, 1], strides = [1, 1]} : vector<20x5xf32> to vector<20x1xf32>
    %cst_15 = arith.constant dense<0.000000e+00> : vector<20x128xf32>
    %23 = tpu.matmul %21, %19, %cst_15 {dimension_numbers = #tpu.dot_dimension_numbers<[1], [0], [0], [1], [0, 0, 1, 1], [], []>} : vector<20x10xf32>, vector<10x128xf32>, vector<20x128xf32> -> vector<20x128xf32>
    %24 = vector.broadcast %22 : vector<20x1xf32> to vector<20x128xf32>
    %25 = arith.addf %23, %24 : vector<20x128xf32>
    %cst_16 = arith.constant 0.000000e+00 : f32
    %26 = vector.broadcast %cst_16 : f32 to vector<20x128xf32>
    %27 = arith.cmpf oge, %25, %26 : vector<20x128xf32>
    %cst_17 = arith.constant -8.000000e-01 : f32
    %28 = vector.broadcast %cst_17 : f32 to vector<20x128xf32>
    %29 = arith.mulf %28, %25 : vector<20x128xf32>
    %30 = arith.select %27, %25, %29 : vector<20x128xi1>, vector<20x128xf32>
    %31 = vector.extract_strided_slice %1 {offsets = [2, 0, 0], sizes = [1, 15, 20], strides = [1, 1, 1]} : vector<5x20x20xf32> to vector<1x15x20xf32>
    %32 = vector.shape_cast %31 : vector<1x15x20xf32> to vector<15x20xf32>
    %33 = vector.extract_strided_slice %2 {offsets = [0, 2], sizes = [15, 1], strides = [1, 1]} : vector<20x5xf32> to vector<15x1xf32>
    %cst_18 = arith.constant dense<0.000000e+00> : vector<15x128xf32>
    %34 = tpu.matmul %32, %30, %cst_18 {dimension_numbers = #tpu.dot_dimension_numbers<[1], [0], [0], [1], [0, 0, 1, 1], [], []>} : vector<15x20xf32>, vector<20x128xf32>, vector<15x128xf32> -> vector<15x128xf32>
    %35 = vector.broadcast %33 : vector<15x1xf32> to vector<15x128xf32>
    %36 = arith.addf %34, %35 : vector<15x128xf32>
    %cst_19 = arith.constant 0.000000e+00 : f32
    %37 = vector.broadcast %cst_19 : f32 to vector<15x128xf32>
    %38 = arith.cmpf oge, %36, %37 : vector<15x128xf32>
    %cst_20 = arith.constant -8.000000e-01 : f32
    %39 = vector.broadcast %cst_20 : f32 to vector<15x128xf32>
    %40 = arith.mulf %39, %36 : vector<15x128xf32>
    %41 = arith.select %38, %36, %40 : vector<15x128xi1>, vector<15x128xf32>
    %42 = vector.extract_strided_slice %1 {offsets = [3, 0, 0], sizes = [1, 10, 15], strides = [1, 1, 1]} : vector<5x20x20xf32> to vector<1x10x15xf32>
    %43 = vector.shape_cast %42 : vector<1x10x15xf32> to vector<10x15xf32>
    %44 = vector.extract_strided_slice %2 {offsets = [0, 3], sizes = [10, 1], strides = [1, 1]} : vector<20x5xf32> to vector<10x1xf32>
    %cst_21 = arith.constant dense<0.000000e+00> : vector<10x128xf32>
    %45 = tpu.matmul %43, %41, %cst_21 {dimension_numbers = #tpu.dot_dimension_numbers<[1], [0], [0], [1], [0, 0, 1, 1], [], []>} : vector<10x15xf32>, vector<15x128xf32>, vector<10x128xf32> -> vector<10x128xf32>
    %46 = vector.broadcast %44 : vector<10x1xf32> to vector<10x128xf32>
    %47 = arith.addf %45, %46 : vector<10x128xf32>
    %cst_22 = arith.constant 0.000000e+00 : f32
    %48 = vector.broadcast %cst_22 : f32 to vector<10x128xf32>
    %49 = arith.cmpf oge, %47, %48 : vector<10x128xf32>
    %cst_23 = arith.constant -8.000000e-01 : f32
    %50 = vector.broadcast %cst_23 : f32 to vector<10x128xf32>
    %51 = arith.mulf %50, %47 : vector<10x128xf32>
    %52 = arith.select %49, %47, %51 : vector<10x128xi1>, vector<10x128xf32>
    %53 = vector.extract_strided_slice %1 {offsets = [4, 0, 0], sizes = [1, 12, 10], strides = [1, 1, 1]} : vector<5x20x20xf32> to vector<1x12x10xf32>
    %54 = vector.shape_cast %53 : vector<1x12x10xf32> to vector<12x10xf32>
    %55 = vector.extract_strided_slice %2 {offsets = [0, 4], sizes = [12, 1], strides = [1, 1]} : vector<20x5xf32> to vector<12x1xf32>
    %cst_24 = arith.constant dense<0.000000e+00> : vector<12x128xf32>
    %56 = tpu.matmul %54, %52, %cst_24 {dimension_numbers = #tpu.dot_dimension_numbers<[1], [0], [0], [1], [0, 0, 1, 1], [], []>} : vector<12x10xf32>, vector<10x128xf32>, vector<12x128xf32> -> vector<12x128xf32>
    %57 = vector.broadcast %55 : vector<12x1xf32> to vector<12x128xf32>
    %58 = arith.addf %56, %57 : vector<12x128xf32>
    %59 = vector.extract_strided_slice %3 {offsets = [0, 0, 0], sizes = [1, 10, 1], strides = [1, 1, 1]} : vector<5x20x20xf32> to vector<1x10x1xf32>
    %60 = vector.shape_cast %59 : vector<1x10x1xf32> to vector<10x1xf32>
    %61 = vector.broadcast %60 : vector<10x1xf32> to vector<10x128xf32>
    %62 = vector.broadcast %8 : vector<1x128xf32> to vector<10x128xf32>
    %63 = arith.mulf %61, %62 : vector<10x128xf32>
    %64 = vector.extract_strided_slice %4 {offsets = [0, 0], sizes = [10, 1], strides = [1, 1]} : vector<20x5xf32> to vector<10x1xf32>
    %65 = vector.broadcast %64 : vector<10x1xf32> to vector<10x128xf32>
    %66 = arith.addf %63, %65 : vector<10x128xf32>
    %cst_25 = arith.constant 0.000000e+00 : f32
    %67 = vector.broadcast %cst_25 : f32 to vector<10x128xf32>
    %68 = arith.cmpf oge, %66, %67 : vector<10x128xf32>
    %cst_26 = arith.constant -8.000000e-01 : f32
    %69 = vector.broadcast %cst_26 : f32 to vector<10x128xf32>
    %70 = arith.mulf %69, %66 : vector<10x128xf32>
    %71 = arith.select %68, %66, %70 : vector<10x128xi1>, vector<10x128xf32>
    %72 = vector.extract_strided_slice %3 {offsets = [1, 0, 0], sizes = [1, 20, 10], strides = [1, 1, 1]} : vector<5x20x20xf32> to vector<1x20x10xf32>
    %73 = vector.shape_cast %72 : vector<1x20x10xf32> to vector<20x10xf32>
    %74 = vector.extract_strided_slice %4 {offsets = [0, 1], sizes = [20, 1], strides = [1, 1]} : vector<20x5xf32> to vector<20x1xf32>
    %cst_27 = arith.constant dense<0.000000e+00> : vector<20x128xf32>
    %75 = tpu.matmul %73, %71, %cst_27 {dimension_numbers = #tpu.dot_dimension_numbers<[1], [0], [0], [1], [0, 0, 1, 1], [], []>} : vector<20x10xf32>, vector<10x128xf32>, vector<20x128xf32> -> vector<20x128xf32>
    %76 = vector.broadcast %74 : vector<20x1xf32> to vector<20x128xf32>
    %77 = arith.addf %75, %76 : vector<20x128xf32>
    %cst_28 = arith.constant 0.000000e+00 : f32
    %78 = vector.broadcast %cst_28 : f32 to vector<20x128xf32>
    %79 = arith.cmpf oge, %77, %78 : vector<20x128xf32>
    %cst_29 = arith.constant -8.000000e-01 : f32
    %80 = vector.broadcast %cst_29 : f32 to vector<20x128xf32>
    %81 = arith.mulf %80, %77 : vector<20x128xf32>
    %82 = arith.select %79, %77, %81 : vector<20x128xi1>, vector<20x128xf32>
    %83 = vector.extract_strided_slice %3 {offsets = [2, 0, 0], sizes = [1, 15, 20], strides = [1, 1, 1]} : vector<5x20x20xf32> to vector<1x15x20xf32>
    %84 = vector.shape_cast %83 : vector<1x15x20xf32> to vector<15x20xf32>
    %85 = vector.extract_strided_slice %4 {offsets = [0, 2], sizes = [15, 1], strides = [1, 1]} : vector<20x5xf32> to vector<15x1xf32>
    %cst_30 = arith.constant dense<0.000000e+00> : vector<15x128xf32>
    %86 = tpu.matmul %84, %82, %cst_30 {dimension_numbers = #tpu.dot_dimension_numbers<[1], [0], [0], [1], [0, 0, 1, 1], [], []>} : vector<15x20xf32>, vector<20x128xf32>, vector<15x128xf32> -> vector<15x128xf32>
    %87 = vector.broadcast %85 : vector<15x1xf32> to vector<15x128xf32>
    %88 = arith.addf %86, %87 : vector<15x128xf32>
    %cst_31 = arith.constant 0.000000e+00 : f32
    %89 = vector.broadcast %cst_31 : f32 to vector<15x128xf32>
    %90 = arith.cmpf oge, %88, %89 : vector<15x128xf32>
    %cst_32 = arith.constant -8.000000e-01 : f32
    %91 = vector.broadcast %cst_32 : f32 to vector<15x128xf32>
    %92 = arith.mulf %91, %88 : vector<15x128xf32>
    %93 = arith.select %90, %88, %92 : vector<15x128xi1>, vector<15x128xf32>
    %94 = vector.extract_strided_slice %3 {offsets = [3, 0, 0], sizes = [1, 10, 15], strides = [1, 1, 1]} : vector<5x20x20xf32> to vector<1x10x15xf32>
    %95 = vector.shape_cast %94 : vector<1x10x15xf32> to vector<10x15xf32>
    %96 = vector.extract_strided_slice %4 {offsets = [0, 3], sizes = [10, 1], strides = [1, 1]} : vector<20x5xf32> to vector<10x1xf32>
    %cst_33 = arith.constant dense<0.000000e+00> : vector<10x128xf32>
    %97 = tpu.matmul %95, %93, %cst_33 {dimension_numbers = #tpu.dot_dimension_numbers<[1], [0], [0], [1], [0, 0, 1, 1], [], []>} : vector<10x15xf32>, vector<15x128xf32>, vector<10x128xf32> -> vector<10x128xf32>
    %98 = vector.broadcast %96 : vector<10x1xf32> to vector<10x128xf32>
    %99 = arith.addf %97, %98 : vector<10x128xf32>
    %cst_34 = arith.constant 0.000000e+00 : f32
    %100 = vector.broadcast %cst_34 : f32 to vector<10x128xf32>
    %101 = arith.cmpf oge, %99, %100 : vector<10x128xf32>
    %cst_35 = arith.constant -8.000000e-01 : f32
    %102 = vector.broadcast %cst_35 : f32 to vector<10x128xf32>
    %103 = arith.mulf %102, %99 : vector<10x128xf32>
    %104 = arith.select %101, %99, %103 : vector<10x128xi1>, vector<10x128xf32>
    %105 = vector.extract_strided_slice %3 {offsets = [4, 0, 0], sizes = [1, 12, 10], strides = [1, 1, 1]} : vector<5x20x20xf32> to vector<1x12x10xf32>
    %106 = vector.shape_cast %105 : vector<1x12x10xf32> to vector<12x10xf32>
    %107 = vector.extract_strided_slice %4 {offsets = [0, 4], sizes = [12, 1], strides = [1, 1]} : vector<20x5xf32> to vector<12x1xf32>
    %cst_36 = arith.constant dense<0.000000e+00> : vector<12x128xf32>
    %108 = tpu.matmul %106, %104, %cst_36 {dimension_numbers = #tpu.dot_dimension_numbers<[1], [0], [0], [1], [0, 0, 1, 1], [], []>} : vector<12x10xf32>, vector<10x128xf32>, vector<12x128xf32> -> vector<12x128xf32>
    %109 = vector.broadcast %107 : vector<12x1xf32> to vector<12x128xf32>
    %110 = arith.addf %108, %109 : vector<12x128xf32>
    %111 = arith.subf %58, %110 : vector<12x128xf32>
    %112 = math.tanh %111 : vector<12x128xf32>
    %c0_37 = arith.constant 0 : index
    %c0_38 = arith.constant 0 : index
    %113 = vector.load %arg6[%c0_37, %c0_38] : memref<12x128xf32, #tpu.memory_space<vmem>>, vector<12x128xf32>
    tpu.vector_store %arg6[%c0_37, %c0_38], %112 {strides = array<i32>} : memref<12x128xf32, #tpu.memory_space<vmem>>, vector<12x128xf32>,
    return
  }
  func.func @transform_0(%arg0: i32) -> (i32, i32) {
    %c0_i32 = arith.constant 0 : i32
    %c0_i32_0 = arith.constant 0 : i32
    return %c0_i32, %arg0 : i32, i32
  }
  func.func @transform_1(%arg0: i32) -> (i32, i32, i32) {
    %c0_i32 = arith.constant 0 : i32
    %c0_i32_0 = arith.constant 0 : i32
    %c0_i32_1 = arith.constant 0 : i32
    %c0_i32_2 = arith.constant 0 : i32
    return %c0_i32, %c0_i32_0, %c0_i32_1 : i32, i32, i32
  }
  func.func @transform_2(%arg0: i32) -> (i32, i32) {
    %c0_i32 = arith.constant 0 : i32
    %c0_i32_0 = arith.constant 0 : i32
    %c0_i32_1 = arith.constant 0 : i32
    return %c0_i32, %c0_i32_0 : i32, i32
  }
  func.func @transform_3(%arg0: i32) -> (i32, i32, i32) {
    %c0_i32 = arith.constant 0 : i32
    %c0_i32_0 = arith.constant 0 : i32
    %c0_i32_1 = arith.constant 0 : i32
    %c0_i32_2 = arith.constant 0 : i32
    return %c0_i32, %c0_i32_0, %c0_i32_1 : i32, i32, i32
  }
  func.func @transform_4(%arg0: i32) -> (i32, i32) {
    %c0_i32 = arith.constant 0 : i32
    %c0_i32_0 = arith.constant 0 : i32
    %c0_i32_1 = arith.constant 0 : i32
    return %c0_i32, %c0_i32_0 : i32, i32
  }
  func.func @transform_5(%arg0: i32) -> (i32, i32) {
    %c0_i32 = arith.constant 0 : i32
    %c0_i32_0 = arith.constant 0 : i32
    return %c0_i32, %arg0 : i32, i32
  }
}

</mosaic_0001>

<bundles_post_ra>
// kernel: tpu_custom_call.1
= control target key start
LH: loop header
LB: loop body
LE: loop exit
PB: predicated region body
PF: predicated region fallthrough
CT: control target
= control target key end

     0   :  { %10 = vsyncpa [#allocation4], 0  ;;  %s2166_s0 = inlined_call_operand.vmem [shape: f32[16,384], index: 0, kind: input, shape index: {}]   ;;  %s2167_s1 = inlined_call_operand.hbm [shape: f32[5,20,20], index: 1, kind: input, shape index: {}]   ;;  %s2168_s2 = inlined_call_operand.vmem [shape: f32[20,5], index: 2, kind: input, shape index: {}]   ;;  %s2169_s3 = inlined_call_operand.hbm [shape: f32[5,20,20], index: 3, kind: input, shape index: {}]   ;;  %s2170_s4 = inlined_call_operand.vmem [shape: f32[20,5], index: 4, kind: input, shape index: {}]   ;;  %s2171_s5 = inlined_call_operand.hbm [shape: f32[12,384], index: 5, kind: output, shape index: {}]  }
   0x1   :  { %11 = vsyncpa [#allocation7], 0 }
   0x2   :  { %12 = vsyncpa [#allocation5], 0 }
   0x3   :  { %14 = vsyncpa [#allocation5 + $0x1], 0  ;;  %s1852_s18 = smov 0   ;;  %s1854_s19 = smov 0  }
   0x4   :  { %s1856_s20 = smov 0   ;;  %s1858_s21 = smov 0  }
   0x5 LB: > { %s1873_s22 = sadd.s32 4294967295, %s1803_s21   ;;  %s1377_s23 = sadd.s32 4294967294, %s1803_s21   ;;  %s1803_s21 = sphi %s1858_s21, %s2195_s21   ;;  %s1799_s20 = sphi %s1856_s20, %s2194_s20   ;;  %s1795_s19 = sphi %s1854_s19, %s2193_s19   ;;  %s1791_s18 = sphi %s1852_s18, %s2192_s18  }
   0x6   : > { %s1877_s24 = sadd.s32 1, %s1803_s21   ;;  %s27_s25 = sadd.s32 1, %s1799_s20 }
   0x7   : > { %s24_s26 = ssub.s32 %s1803_s21, %s1877_s24  ;;  %p34_p0 = scmp.ne.s32.totalorder %s1799_s20, %s1795_s19 }
   0x8   : > { %p25_p1 = scmp.eq.s32.totalorder %s24_s26, 0  ;;  %p35_p2 = scmp.eq.s32.totalorder %s1803_s21, 0 }
   0x9   : > { %p148_p3 = scmp.eq.s32.totalorder %s1873_s22, 2  ;;  %p153_p4 = scmp.ne.s32.totalorder %s1795_s19, %s1791_s18 }
   0xa   : > { %s1889_s27 = scalar_select %p25_p1, %s1799_s20, %s27_s25  }
   0xb   : > { %p1891_p5 = por %p35_p2, %p34_p0  ;;  %p1895_p6 = por %p148_p3, %p34_p0 }
   0xc   : > { %p154_p7 = scmp.eq.s32.totalorder %s1377_s23, 2  ;;  %p1378_p8 = scmp.ge.s32.totalorder %s1803_s21, 1 }
   0xd   : > { %s2175_s28 = scalar_select %p1891_p5, 1, 0 }
   0xe   : > { %s2176_s29 = scalar_select %p1895_p6, 1, 0 }
   0xf   : > { %p161_p9 = scmp.lt.s32.totalorder %s1803_s21, 4  ;;  %p1901_p10 = por %p154_p7, %p153_p4 }
  0x10   : > { %p2172_p11 = scmp.eq.s32.totalorder %s1873_s22, 0  ;;  %s1805_s7 = smov [#allocation3]  }
  0x11   : > { %s2177_s30 = scalar_select %p1901_p10, 1, 0 }
  0x12   : > { %p1906_p12 = pnand %p1378_p8, %p161_p9  ;;  %s173_s8 = sshll.u32 %s1805_s7, 4  ;;  %s174_s8 = int_to_ptr.vmem [resolvable:$true] %s173_s8 }
  0x13   : > { %s1806_s10 = smov [#allocation6]   ;;  %s1677_s14 = scalar_lea.hbm %s2167_s1, 1920 }
  0x14   : > { %s2178_s6 = scalar_select %p1906_p12, 1, 0 }
  0x15   : > { %p1594_p13 = pneg %p1906_p12  ;;  %s189_s11 = sshll.u32 %s1806_s10, 4  ;;  %s1918_s11 = int_to_ptr.vmem [resolvable:$true] %s189_s11 }
  0x16   : > { %p1678_p1 = scmp.ne.s32.totalorder %s2167_s1, %s1677_s14  ;;  %p1684_p7 = scmp.lt.u32.totalorder %s1677_s14, %s2167_s1 }
  0x17   : > { %p1914_p0 = pnand %p2172_p11, %p1594_p13 }
  0x19   : > { %p1679_p2 = pneg %p1914_p0 }
  0x1b   : > { %p1680_p3 = pnand %p1679_p2, %p1678_p1 }
  0x1d   : > { %p1681_p4 = pneg %p1680_p3 }
  0x1f   : > { %p1686_p8 = pnand %p1684_p7, %p1681_p4 }
  0x21   : > { %1689 = shalt.err (!%p1686_p8)
}
  0x22   : > { %s1690_s25 = scalar_lea.vmem %s174_s8, 1920  ;;  %p1698_p10 = scmp.lt.s32.totalorder %s174_s8, %s174_s8 }
  0x23   : > { %p1691_p9 = scmp.ne.s32.totalorder %s174_s8, %s1690_s25  ;;  %p1699_p6 = scmp.lt.s32.totalorder %s1690_s25, %s1690_s25 }
  0x25   : > { %p1693_p13 = pnand %p1691_p9, %p1679_p2  ;;  %p1700_p12 = por %p1699_p6, %p1698_p10 }
  0x27   : > { %p1694_p11 = pneg %p1693_p13 }
  0x29   : > { %p1701_p5 = pnand %p1700_p12, %p1694_p11 }
  0x2b   : > { %1704 = shalt.err (!%p1701_p5)
}
  0x2c   : > { %s1807_s26 = smov 128   ;;  %s1808_s7 = smov 8  }
  0x2d   : > { %1597 = dma.hbm_to_vmem [thread:$0]  (!%p1914_p0), %s2167_s1, 1920, %s174_s8, [#allocation4], %s1807_s26, %s1807_s26, %s1808_s7  }
  0x2e   : > { %s1705_s15 = scalar_lea.hbm %s2169_s3, 1920 }
  0x2f   : > { %p1706_p1 = scmp.ne.s32.totalorder %s2169_s3, %s1705_s15  ;;  %p1712_p10 = scmp.lt.u32.totalorder %s1705_s15, %s2169_s3 }
  0x31   : > { %p1708_p5 = pnand %p1706_p1, %p1679_p2 }
  0x33   : > { %p1709_p6 = pneg %p1708_p5 }
  0x35   : > { %p1714_p11 = pnand %p1712_p10, %p1709_p6 }
  0x37   : > { %1717 = shalt.err (!%p1714_p11)
}
  0x38   : > { %s1718_s8 = scalar_lea.vmem %s1918_s11, 1920  ;;  %p1726_p7 = scmp.lt.s32.totalorder %s1918_s11, %s1918_s11 }
  0x39   : > { %p1719_p12 = scmp.ne.s32.totalorder %s1918_s11, %s1718_s8  ;;  %p1727_p8 = scmp.lt.s32.totalorder %s1718_s8, %s1718_s8 }
  0x3b   : > { %p1721_p3 = pnand %p1719_p12, %p1679_p2  ;;  %p1728_p9 = por %p1727_p8, %p1726_p7 }
  0x3d   : > { %p1722_p4 = pneg %p1721_p3 }
  0x3f   : > { %p1729_p13 = pnand %p1728_p9, %p1722_p4 }
  0x41   : > { %1732 = shalt.err (!%p1729_p13)
}
  0x42   : > { %1600 = dma.hbm_to_vmem [thread:$0]  (!%p1914_p0), %s2169_s3, 1920, %s1918_s11, [#allocation7], %s1807_s26, %s1807_s26, %s1808_s7  }
  0x43   : > { %p1381_p1 = scmp.ge.s32.totalorder %s1803_s21, 3 }
  0x44   : > { %p2180_p5 = scmp.ne.s32.totalorder (!%p1381_p1), %s2175_s28, 0 }
  0x45   : > { %202 = sbr.rel (%p1381_p1) target bundleno = 83 (0x53), region = 32 }
  0x4c   : > { %205 = sbr.rel (!%p2180_p5) target bundleno = 83 (0x53), region = 36  ;;  %s207_s13 = sand.u32 (%p2180_p5), 1, %s1799_s20  }
  0x4d   : > { %s1383_s14 = sshll.u32 (%p2180_p5), %s1803_s21, 3  ;;  %s1382_s15 = sshll.u32 (%p2180_p5), %s207_s13, 4 }
  0x4e   : > { %s211_s9 = scalar_lea.vmem (%p2180_p5), %s2166_s0, %s1383_s14  ;;  %s209_s23 = scalar_lea.vmem (%p2180_p5), [#allocation2], %s1382_s15 }
  0x4f   : > { %v241_v0 = vld [vmem:[%s211_s9] sm:$0xff] (%p2180_p5)  ;;  %v243_v1 = vld [vmem:[%s211_s9 + $0x18] sm:$0xff] (%p2180_p5) }
  0x50   : > { %242 = vst [vmem:[%s209_s23] sm:$0xff] (%p2180_p5), %v241_v0  ;;  %244 = vst [vmem:[%s209_s23 + $0x8] sm:$0xff] (%p2180_p5), %v243_v1 }
  0x53 PF: > { %p2181_p0 = scmp.ne.s32.totalorder %s2178_s6, 0 }
  0x54   : > { %s256_s28 = sand.u32 (!%p2181_p0), 1, %s1795_s19   ;;  %p2182_p2 = scmp.eq.s32.totalorder (!%p2181_p0), %s1873_s22, 0 }
  0x55   : > { %253 = sbr.rel (%p2181_p0) target bundleno = 1704 (0x6a8), region = 74  ;;  %s1980_s11 = sshll.u32 (!%p2181_p0), %s256_s28, 4 }
  0x56   : > { %s258_s26 = scalar_lea.vmem (!%p2181_p0), [#allocation2], %s1980_s11 }
  0x5c   : > { %1778 = dma.done.wait (%p2182_p2), [#allocation4], 1920   ;;  %p2183_p6 = pmov %p2182_p2 }
  0x5d   : > { %p2184_p10 = pmov %p2182_p2 }
  0x5e   : > { %1780 = vsyncadd (%p2183_p6), [#allocation4], 4294965376 }
  0x5f   : > { %1782 = dma.done.wait (%p2184_p10), [#allocation7], 1920   ;;  %p2185_p11 = pmov %p2182_p2 }
  0x60   : > { %v1809_v2 = vmov 0   ;;  %vm340_vm0 = vcmask 130048   ;;  %v291_v3 = vld [vmem:[%s258_s26] sm:$0xff]  ;;  %v292_v4 = vld [vmem:[%s258_s26 + $0x8] sm:$0xff]  ;;  %v1810_v11 = vmov 0.0|0.0   ;;  %vm1811_vm1 = vmmov 0  }
  0x61   : > { %1784 = vsyncadd (%p2185_p11), [#allocation7], 4294965376  ;;  %1658 = vset.pattern.permute.xlu0 %v1809_v2  ;;  %v293_v5 = vld [vmem:[#allocation3] sm:$0xff]  ;;  %v1992_v6 = vadd.f32 %v292_v4, %v291_v3  ;;  %v1540_v7 = vpack.c.bf16 %v292_v4, %v291_v3  ;;  %v2003_v9 = vld [vmem:[%s2168_s2 + $0x8] sm:$0xff]  ;;  %1544 = vmatprep.subr.bf16.mxu1 %v1810_v11  ;;  %v1812_v12 = vmov 0.0   ;;  %v1813_v14 = vmov 1  }
  0x62   : > { %1465 = vmatprep.mubr.msk.f32.mxu0 %vm340_vm0, %v293_v5  ;;  %v1997_v8 = vld [vmem:[%s2168_s2] sm:$0xff]  ;;  %v294_v10 = vld [vmem:[#allocation3 + $0x8] sm:$0xff]  ;;  %1472 = vmatprep.mubr.msk.f32.mxu1 %vm1811_vm1, %v1812_v12  ;;  %v306_v13 = vld [vmem:[%s2168_s2 + $0x10] sm:$0xf]  ;;  %vm451_vm3 = vcmask 1041408   ;;  %vm1814_vm5 = vmmov 1  }
  0x63   : > { %332 = vperm.xlu0 %1658, %v1997_v8   ;;  %1541 = vmatprep.subr.bf16.mxu0 %v1540_v7  ;;  %vm2018_vm6 = vmpackc.low %vm451_vm3, %vm1814_vm5  ;;  %v295_v27 = vld [vmem:[#allocation3 + $0x18] sm:$0xff]  ;;  %vm441_vm7 = vcmask 80896   ;;  %v296_v28 = vld [vmem:[#allocation3 + $0x20] sm:$0xff]  ;;  %vm552_vm8 = vcmask 162816   ;;  %v1815_v32 = vmov 2   ;;  %vm559_vm12 = vcmask 1043456  }
  0x64   : > { %1543 = vmatpush3.bf16.msra.mxu0 %v1540_v7  ;;  %1659 = vset.pattern.permute.xlu1 %v1813_v14  ;;  %v297_v29 = vld [vmem:[#allocation3 + $0x28] sm:$0xf]  ;;  %v298_v30 = vld [vmem:[#allocation3 + $0x30] sm:$0xff]  ;;  %v307_v31 = vld [vmem:[#allocation6] sm:$0xff]  ;;  %vm652_vm13 = vcmask 121856   ;;  %v1816_v57 = vmov 3  }
  0x65   : > { %429 = vperm.xlu1 %1659, %v1997_v8   ;;  %v2036_v33 = vld [vmem:[%s2170_s4 + $0x8] sm:$0xff]  ;;  %v308_v34 = vld [vmem:[#allocation6 + $0x8] sm:$0xff]  ;;  %v299_v55 = vld [vmem:[#allocation3 + $0x38] sm:$0xff]  ;;  %v322_v59 = vrot.slane %v1992_v6, 4  ;;  %vm659_vm15 = vcmask 1046528   ;;  %s1418_s23 = sshll.u32 %s1873_s22, 7 }
  0x66   : > { %v2044_v35 = vld [vmem:[%s2170_s4] sm:$0xff]  ;;  %v300_v56 = vld [vmem:[#allocation3 + $0x48] sm:$0xff]  ;;  %v320_v58 = vld [vmem:[%s2170_s4 + $0x10] sm:$0xf]  ;;  %s290_s26 = scalar_lea.vmem [#allocation8], %s1980_s11  ;;  %s2119_s8 = scalar_lea.hbm %s2171_s5, %s1418_s23 }
  0x67   : > { %337 = vperm.xlu0 %1658, %v2003_v9   ;;  %1466 = vmatmul.mubr.msk.f32.vlgmr.msra.gmra.mrb[0].mxu0 %vm340_vm0, %v294_v10  ;;  %v323_v60 = vadd.f32 %v322_v59, %v1992_v6  ;;  %s1287_s6 = sshll.u32 %s290_s26, 4  ;;  %s2125_s10 = scalar_lea.sflag [#allocation5], %s256_s28  ;;  %s2121_s6 = int_to_ptr.vmem [resolvable:$true] %s1287_s6 }
  0x68   : > { %1487 = vmatprep.mubr.msk.f32.mxu0 %vm552_vm8, %v298_v30  ;;  %s1733_s22 = scalar_lea.vmem %s2121_s6, 256  ;;  %p2190_p3 = scmp.ne.s32.totalorder %s2176_s29, 0 }
  0x69   : > { %433 = vperm.xlu1 %1659, %v2003_v9   ;;  %v324_v61 = vrot.slane %v323_v60, 2  ;;  %p1734_p12 = scmp.ne.s32.totalorder %s2121_s6, %s1733_s22  ;;  %s1818_s11 = smov [#allocation8]  }
  0x6a   : > { %s1737_s12 = sshll.u32 %s1818_s11, 4  ;;  %s1738_s12 = int_to_ptr.vmem [resolvable:$false] %s1737_s12 }
  0x6b   : > { %1660 = vset.pattern.permute.xlu0 %v1813_v14  ;;  %v325_v63 = vadd.f32 %v324_v61, %v323_v60  ;;  %p1735_p4 = pnand %p1734_p12, %p2190_p3  ;;  %s1739_s13 = scalar_lea.vmem %s1738_s12, 512 }
  0x6c   : > { %438 = vperm.xlu0 %1660, %v306_v13   ;;  %p1740_p8 = scmp.lt.s32.totalorder %s2121_s6, %s1738_s12  ;;  %p1741_p9 = scmp.lt.s32.totalorder %s1739_s13, %s1733_s22 }
  0x6d   : > { %1661 = vset.pattern.permute.xlu1 %v1815_v32  ;;  %v326_v0 = vrot.slane %v325_v63, 1  ;;  %p1736_p7 = pneg %p1735_p4 }
  0x6e   : > { %545 = vperm.xlu1 %1661, %v1997_v8   ;;  %p1742_p13 = por %p1741_p9, %p1740_p8 }
  0x70   : > { %1662 = vset.pattern.permute.xlu0 %v1809_v2  ;;  %p1743_p1 = pnand %p1742_p13, %p1736_p7 }
  0x71   : > { %838 = vperm.xlu0 %1662, %v307_v31   ;;  %v301_v31 = vld [vmem:[#allocation3 + $0x50] sm:$0xff] }
  0x72   : > { %549 = vperm.xlu1 %1661, %v2003_v9  }
  0x75   : > { %855 = vperm.xlu0 %1662, %v2036_v33  }
  0x76   : > { %1663 = vset.pattern.permute.xlu1 %v1809_v2  ;;  %v327_v2 = vadd.f32 %v326_v0, %v325_v63 }
  0x77   : > { %843 = vperm.xlu1 %1663, %v308_v34   ;;  %v309_v34 = vld [vmem:[#allocation6 + $0x18] sm:$0xff] }
  0x78   : > { %v329_v5 = vmul.f32 0.0625, %v327_v2  ;;  %v313_v2 = vld [vmem:[#allocation6 + $0x38] sm:$0xff] }
  0x79   : > { %1665 = vset.pattern.permute.xlu0 %v1816_v57 }
  0x7a   : > { %649 = vperm.xlu0 %1665, %v2003_v9  }
  0x7b   : > { %850 = vperm.xlu1 %1663, %v2044_v35  }
  0x7e   : > { %1667 = vset.pattern.permute.xlu0 %v1813_v14 }
  0x7f   : > { %1664 = vset.pattern.permute.xlu1 %v1816_v57  ;;  %876 = vperm.xlu0 %1667, %v320_v58  }
  0x80   : > { %645 = vperm.xlu1 %1664, %v1997_v8  }
  0x83   : > { %1669 = vset.pattern.permute.xlu0 %v1816_v57 }
  0x84   : > { %1666 = vset.pattern.permute.xlu1 %v1813_v14  ;;  %1079 = vperm.xlu0 %1669, %v2044_v35  }
  0x85   : > { %867 = vperm.xlu1 %1666, %v2044_v35  }
  0x89   : > { %871 = vperm.xlu1 %1666, %v2036_v33  }
  0x8d   : > { %1668 = vset.pattern.permute.xlu1 %v1815_v32 }
  0x8e   : > { %981 = vperm.xlu1 %1668, %v2044_v35  }
  0x92   : > { %985 = vperm.xlu1 %1668, %v2036_v33  }
  0x96   : > { %1670 = vset.pattern.permute.xlu1 %v1816_v57  ;;  %v312_v57 = vld [vmem:[#allocation6 + $0x30] sm:$0xff] }
  0x97   : > { %1083 = vperm.xlu1 %1670, %v2036_v33  }
  0xe2   : > { %v333_v15 = vpop.permute.xlu0 %332 }
  0xe4   : > { %v430_v36 = vpop.permute.xlu1 %429 }
  0xe6   : > { %v338_v16 = vpop.permute.xlu0 %337 }
  0xe8   : > { %v434_v40 = vpop.permute.xlu1 %433 }
  0xeb   : > { %v439_v45 = vpop.permute.xlu0 %438 }
  0xed   : > { %v546_v62 = vpop.permute.xlu1 %545 }
  0xf0   : > { %v839_v4 = vpop.permute.xlu0 %838 }
  0xf1   : > { %v550_v1 = vpop.permute.xlu1 %549  ;;  %v846_v10 = vmul.f32 %v839_v4, %v329_v5 }
  0xf4   : > { %v856_v14 = vpop.permute.xlu0 %855 }
  0xf6   : > { %v844_v3 = vpop.permute.xlu1 %843 }
  0xf7   : > { %v847_v7 = vmul.f32 %v844_v3, %v329_v5  ;;  %v314_v3 = vld [vmem:[#allocation6 + $0x48] sm:$0xff] }
  0xfa   : > { %v851_v13 = vpop.permute.xlu1 %850 }
 0x13a   : > { %v1467_v17 = vpop.f32.mrb[0].mxu0 }
 0x13b   : > { %v419_v18 = vadd.f32 %v1467_v17, %v338_v16  ;;  %v413_v19 = vpop.f32.mrb[1].mxu0  ;;  %v858_v16 = vadd.f32 %v851_v13, %v846_v10  ;;  %v859_v17 = vadd.f32 %v856_v14, %v847_v7 }
 0x13c   : > { %v414_v20 = vadd.f32 %v413_v19, %v333_v15 }
 0x13d   : > { %vm423_vm2 = vcmp.ge.f32.partialorder %v419_v18, 0.0  ;;  %v425_v21 = vmul.f32 -0.8, %v419_v18  ;;  %vm861_vm3 = vcmp.ge.f32.partialorder %v859_v17, 0.0 }
 0x13e   : > { %vm422_vm4 = vcmp.ge.f32.partialorder %v414_v20, 0.0  ;;  %v424_v22 = vmul.f32 -0.8, %v414_v20 }
 0x13f   : > { %v427_v23 = vsel %vm423_vm2, %v419_v18, %v425_v21  ;;  %vm860_vm2 = vcmp.ge.f32.partialorder %v858_v16, 0.0 }
 0x140   : > { %v426_v24 = vsel %vm422_vm4, %v414_v20, %v424_v22  ;;  %v862_v22 = vmul.f32 -0.8, %v858_v16  ;;  %vm2067_vm4 = vmpackc.low %vm659_vm15, %vm1814_vm5 }
 0x141   : > { %v1545_v26 = vpack.c.bf16 %v427_v23, %v426_v24  ;;  %v863_v23 = vmul.f32 -0.8, %v859_v17 }
 0x143   : > { %1547 = vmatpush3.bf16.msk.msra.mxu1 %vm2018_vm6, %v1545_v26  ;;  %v865_v30 = vsel %vm861_vm3, %v859_v17, %v863_v23 }
 0x146   : > { %1473 = vmatmul.mubr.msk.f32.vlgmr.msra.gmra.mrb[0].mxu1 %vm441_vm7, %v295_v27 }
 0x147   : > { %1475 = vmatprep.mubr.msk.f32.mxu1 %vm1811_vm1, %v1812_v12 }
 0x14a   : > { %1476 = vmatmul.mubr.msk.f32.gmra.mrb[2].mxu1 %vm441_vm7, %v296_v28 }
 0x14b   : > { %1478 = vmatprep.mubr.msk.f32.mxu1 %vm1811_vm1, %v1812_v12 }
 0x14e   : > { %1479 = vmatmul.mubr.msk.f32.gmra.mrb[4].mxu1 %vm441_vm7, %v297_v29  ;;  %v864_v29 = vsel %vm860_vm2, %v858_v16, %v862_v22  ;;  %v316_v22 = vld [vmem:[#allocation6 + $0x60] sm:$0xff] }
 0x14f   : > { %v1565_v32 = vpack.c.bf16 %v865_v30, %v864_v29 }
 0x219   : > { %v521_v37 = vpop.f32.mrb[0].mxu1 }
 0x21a   : > { %v522_v38 = vadd.f32 %v521_v37, %v430_v36  ;;  %v1474_v39 = vpop.f32.mrb[1].mxu1  ;;  %v310_v36 = vld [vmem:[#allocation6 + $0x20] sm:$0xff]  ;;  %v302_v37 = vld [vmem:[#allocation3 + $0x60] sm:$0xff] }
 0x21b   : > { %1501 = vmatprep.mubr.msk.f32.mxu1 %vm441_vm7, %v302_v37  ;;  %v646_v39 = vpop.permute.xlu1 %645 }
 0x21c   : > { %v538_v42 = vmul.f32 -0.8, %v522_v38  ;;  %vm535_vm9 = vcmp.ge.f32.partialorder %v522_v38, 0.0 }
 0x21d   : > { %v526_v41 = vpop.f32.mrb[2].mxu1 }
 0x21e   : > { %v527_v43 = vadd.f32 %v526_v41, %v434_v40  ;;  %v1477_v44 = vpop.f32.mrb[3].mxu1  ;;  %v541_v50 = vsel %vm535_vm9, %v522_v38, %v538_v42  ;;  %v1817_v38 = vmov 4   ;;  %v650_v40 = vpop.permute.xlu0 %649 }
 0x21f   : > { %1671 = vset.pattern.permute.xlu1 %v1817_v38  ;;  %1672 = vset.pattern.permute.xlu0 %v1817_v38 }
 0x220   : > { %vm536_vm10 = vcmp.ge.f32.partialorder %v527_v43, 0.0  ;;  %v539_v46 = vmul.f32 -0.8, %v527_v43  ;;  %745 = vperm.xlu1 %1671, %v1997_v8   ;;  %749 = vperm.xlu0 %1672, %v2003_v9  }
 0x221   : > { %v531_v47 = vpop.f32.mrb[4].mxu1 }
 0x222   : > { %v532_v48 = vadd.f32 %v531_v47, %v439_v45  ;;  %v1480_v49 = vpop.f32.mrb[5].mxu1  ;;  %v542_v51 = vsel %vm536_vm10, %v527_v43, %v539_v46  ;;  %v868_v43 = vpop.permute.xlu1 %867 }
 0x223   : > { %v1548_v52 = vpack.c.bf16 %v542_v51, %v541_v50 }
 0x224   : > { %vm537_vm11 = vcmp.ge.f32.partialorder %v532_v48, 0.0  ;;  %v540_v53 = vmul.f32 -0.8, %v532_v48  ;;  %1177 = vperm.xlu1 %1671, %v2044_v35  }
 0x225   : > { %1549 = vmatprep.subr.bf16.mxu0 %v1548_v52 }
 0x226   : > { %1551 = vmatpush3.bf16.msra.mxu0 %v1548_v52  ;;  %v543_v54 = vsel %vm537_vm11, %v532_v48, %v540_v53  ;;  %v872_v35 = vpop.permute.xlu1 %871 }
 0x227   : > { %1485 = vmatprep.subr.msk.mxu0 %vm559_vm12, %v543_v54 }
 0x228   : > { %1181 = vperm.xlu1 %1671, %v2036_v33  }
 0x22a   : > { %1486 = vmatpush3.msk.msra.mxu0 %vm559_vm12, %v543_v54  ;;  %v877_v54 = vpop.permute.xlu0 %876  ;;  %v982_v7 = vpop.permute.xlu1 %981 }
 0x22b   : > { %1488 = vmatmul.mubr.msk.f32.vlgmr.msra.gmra.mrb[2].mxu0 %vm552_vm8, %v299_v55  ;;  %v303_v55 = vld [vmem:[#allocation3 + $0x68] sm:$0xff] }
 0x22c   : > { %1494 = vmatprep.mubr.msk.f32.mxu0 %vm652_vm13, %v300_v56 }
 0x22e   : > { %v986_v10 = vpop.permute.xlu1 %985 }
 0x232   : > { %v1084_v23 = vpop.permute.xlu1 %1083 }
 0x29f   : > { %v746_v37 = vpop.permute.xlu1 %745 }
 0x2a3   : > { %v1178_v38 = vpop.permute.xlu1 %1177 }
 0x2fe   : > { %v1489_v15 = vpop.f32.mrb[2].mxu0 }
 0x2ff   : > { %v635_v18 = vadd.f32 %v1489_v15, %v550_v1  ;;  %v629_v19 = vpop.f32.mrb[3].mxu0 }
 0x300   : > { %v630_v20 = vadd.f32 %v629_v19, %v546_v62 }
 0x301   : > { %vm639_vm14 = vcmp.ge.f32.partialorder %v635_v18, 0.0  ;;  %v641_v6 = vmul.f32 -0.8, %v635_v18 }
 0x302   : > { %vm638_vm0 = vcmp.ge.f32.partialorder %v630_v20, 0.0  ;;  %v640_v21 = vmul.f32 -0.8, %v630_v20 }
 0x303   : > { %v643_v24 = vsel %vm639_vm14, %v635_v18, %v641_v6 }
 0x304   : > { %v642_v26 = vsel %vm638_vm0, %v630_v20, %v640_v21  ;;  %v315_v21 = vld [vmem:[#allocation6 + $0x50] sm:$0xff] }
 0x305   : > { %v1552_v28 = vpack.c.bf16 %v643_v24, %v642_v26  ;;  %v1080_v26 = vpop.permute.xlu0 %1079 }
 0x307   : > { %1554 = vmatprep.subr.msk.bf16.mxu0 %vm2067_vm4, %v1552_v28 }
 0x308   : > { %1557 = vmatpush3.bf16.msk.msra.mxu0 %vm2067_vm4, %v1552_v28 }
 0x309   : > { %1564 = vmatprep.subr.bf16.mxu0 %v1810_v11  ;;  %v311_v11 = vld [vmem:[#allocation6 + $0x28] sm:$0xf] }
 0x30b   : > { %1495 = vmatmul.mubr.msk.f32.vlgmr.msra.gmra.mrb[4].mxu0 %vm652_vm13, %v301_v31 }
 0x30c   : > { %1567 = vmatpush3.bf16.msk.msra.mxu0 %vm2018_vm6, %v1565_v32  ;;  %1508 = vmatprep.mubr.msk.f32.mxu0 %vm1811_vm1, %v1812_v12 }
 0x30f   : > { %1509 = vmatmul.mubr.msk.f32.vlgmr.msra.gmra.mrb[6].mxu0 %vm441_vm7, %v309_v34 }
 0x310   : > { %1511 = vmatprep.mubr.msk.f32.mxu0 %vm1811_vm1, %v1812_v12 }
 0x313   : > { %1512 = vmatmul.mubr.msk.f32.gmra.mrb[8].mxu0 %vm441_vm7, %v310_v36 }
 0x314   : > { %1514 = vmatprep.mubr.msk.f32.mxu0 %vm1811_vm1, %v1812_v12 }
 0x317   : > { %1515 = vmatmul.mubr.msk.f32.gmra.mrb[10].mxu0 %vm441_vm7, %v311_v11  ;;  %v317_v11 = vld [vmem:[#allocation6 + $0x68] sm:$0xff] }
 0x318   : > { %1537 = vmatprep.mubr.msk.f32.mxu0 %vm441_vm7, %v316_v22 }
 0x3de   : > { %v1496_v12 = vpop.f32.mrb[4].mxu0 }
 0x3df   : > { %v735_v41 = vadd.f32 %v1496_v12, %v650_v40  ;;  %v729_v42 = vpop.f32.mrb[5].mxu0  ;;  %v1182_v40 = vpop.permute.xlu1 %1181 }
 0x3e0   : > { %v730_v44 = vadd.f32 %v729_v42, %v646_v39  ;;  %v750_v39 = vpop.permute.xlu0 %749 }
 0x3e1   : > { %vm739_vm1 = vcmp.ge.f32.partialorder %v735_v41, 0.0  ;;  %v741_v45 = vmul.f32 -0.8, %v735_v41 }
 0x3e2   : > { %vm738_vm5 = vcmp.ge.f32.partialorder %v730_v44, 0.0  ;;  %v740_v46 = vmul.f32 -0.8, %v730_v44  ;;  %v957_v47 = vpop.f32.mrb[6].mxu0 }
 0x3e3   : > { %v743_v48 = vsel %vm739_vm1, %v735_v41, %v741_v45  ;;  %v958_v8 = vadd.f32 %v957_v47, %v868_v43  ;;  %v1510_v49 = vpop.f32.mrb[7].mxu0 }
 0x3e4   : > { %v742_v9 = vsel %vm738_vm5, %v730_v44, %v740_v46 }
 0x3e5   : > { %v1558_v50 = vpack.c.bf16 %v743_v48, %v742_v9  ;;  %v974_v33 = vmul.f32 -0.8, %v958_v8  ;;  %vm971_vm9 = vcmp.ge.f32.partialorder %v958_v8, 0.0 }
 0x3e6   : > { %v962_v51 = vpop.f32.mrb[8].mxu0 }
 0x3e7   : > { %v963_v52 = vadd.f32 %v962_v51, %v872_v35  ;;  %1560 = vmatprep.subr.msk.bf16.mxu1 %vm2018_vm6, %v1558_v50  ;;  %v1513_v53 = vpop.f32.mrb[9].mxu0  ;;  %v977_v61 = vsel %vm971_vm9, %v958_v8, %v974_v33 }
 0x3e8   : > { %1563 = vmatpush3.bf16.msk.msra.mxu1 %vm2018_vm6, %v1558_v50 }
 0x3e9   : > { %vm972_vm10 = vcmp.ge.f32.partialorder %v963_v52, 0.0  ;;  %v975_v56 = vmul.f32 -0.8, %v963_v52 }
 0x3ea   : > { %v967_v58 = vpop.f32.mrb[10].mxu0 }
 0x3eb   : > { %v968_v59 = vadd.f32 %v967_v58, %v877_v54  ;;  %v1516_v60 = vpop.f32.mrb[11].mxu0  ;;  %1502 = vmatmul.mubr.msk.f32.vlgmr.msra.gmra.mrb[6].mxu1 %vm441_vm7, %v303_v55  ;;  %v978_v62 = vsel %vm972_vm10, %v963_v52, %v975_v56 }
 0x3ec   : > { %v1568_v63 = vpack.c.bf16 %v978_v62, %v977_v61  ;;  %1523 = vmatprep.mubr.msk.f32.mxu1 %vm552_vm8, %v312_v57 }
 0x3ed   : > { %vm973_vm11 = vcmp.ge.f32.partialorder %v968_v59, 0.0  ;;  %v976_v0 = vmul.f32 -0.8, %v968_v59 }
 0x3ee   : > { %1569 = vmatprep.subr.bf16.mxu1 %v1568_v63 }
 0x3ef   : > { %1571 = vmatpush3.bf16.msra.mxu1 %v1568_v63  ;;  %v979_v1 = vsel %vm973_vm11, %v968_v59, %v976_v0 }
 0x3f0   : > { %1521 = vmatprep.subr.msk.mxu1 %vm559_vm12, %v979_v1 }
 0x3f3   : > { %1522 = vmatpush3.msk.msra.mxu1 %vm559_vm12, %v979_v1 }
 0x3f4   : > { %1524 = vmatmul.mubr.msk.f32.vlgmr.msra.gmra.mrb[8].mxu1 %vm552_vm8, %v313_v2 }
 0x3f5   : > { %1530 = vmatprep.mubr.msk.f32.mxu1 %vm652_vm13, %v314_v3 }
 0x4be   : > { %v1503_v4 = vpop.f32.mrb[6].mxu1 }
 0x4bf   : > { %v827_v5 = vpop.f32.mrb[7].mxu1  ;;  %v833_v41 = vadd.f32 %v1503_v4, %v750_v39 }
 0x4c0   : > { %v828_v44 = vadd.f32 %v827_v5, %v746_v37 }
 0x4c7   : > { %v1525_v13 = vpop.f32.mrb[8].mxu1 }
 0x4c8   : > { %v1069_v14 = vadd.f32 %v1525_v13, %v986_v10  ;;  %v1063_v15 = vpop.f32.mrb[9].mxu1 }
 0x4c9   : > { %v1064_v16 = vadd.f32 %v1063_v15, %v982_v7 }
 0x4ca   : > { %vm1073_vm14 = vcmp.ge.f32.partialorder %v1069_v14, 0.0  ;;  %v1075_v17 = vmul.f32 -0.8, %v1069_v14 }
 0x4cb   : > { %vm1072_vm15 = vcmp.ge.f32.partialorder %v1064_v16, 0.0  ;;  %v1074_v18 = vmul.f32 -0.8, %v1064_v16 }
 0x4cc   : > { %v1077_v19 = vsel %vm1073_vm14, %v1069_v14, %v1075_v17 }
 0x4cd   : > { %v1076_v20 = vsel %vm1072_vm15, %v1064_v16, %v1074_v18 }
 0x4ce   : > { %v1572_v6 = vpack.c.bf16 %v1077_v19, %v1076_v20 }
 0x4d0   : > { %1574 = vmatprep.subr.msk.bf16.mxu1 %vm2067_vm4, %v1572_v6 }
 0x4d1   : > { %1577 = vmatpush3.bf16.msk.msra.mxu1 %vm2067_vm4, %v1572_v6 }
 0x4d4   : > { %1531 = vmatmul.mubr.msk.f32.vlgmr.msra.gmra.mrb[10].mxu1 %vm652_vm13, %v315_v21 }
 0x5a7   : > { %v1532_v24 = vpop.f32.mrb[10].mxu1 }
 0x5a8   : > { %v1167_v28 = vadd.f32 %v1532_v24, %v1084_v23  ;;  %v1161_v29 = vpop.f32.mrb[11].mxu1 }
 0x5a9   : > { %v1162_v30 = vadd.f32 %v1161_v29, %v1080_v26 }
 0x5aa   : > { %vm1171_vm8 = vcmp.ge.f32.partialorder %v1167_v28, 0.0  ;;  %v1173_v31 = vmul.f32 -0.8, %v1167_v28 }
 0x5ab   : > { %vm1170_vm12 = vcmp.ge.f32.partialorder %v1162_v30, 0.0  ;;  %v1172_v32 = vmul.f32 -0.8, %v1162_v30 }
 0x5ac   : > { %v1175_v34 = vsel %vm1171_vm8, %v1167_v28, %v1173_v31 }
 0x5ad   : > { %v1174_v36 = vsel %vm1170_vm12, %v1162_v30, %v1172_v32 }
 0x5ae   : > { %v1578_v27 = vpack.c.bf16 %v1175_v34, %v1174_v36 }
 0x5b0   : > { %1580 = vmatprep.subr.msk.bf16.mxu0 %vm2018_vm6, %v1578_v27 }
 0x5b1   : > { %1583 = vmatpush3.bf16.msk.msra.mxu0 %vm2018_vm6, %v1578_v27 }
 0x5b4   : > { %1538 = vmatmul.mubr.msk.f32.vlgmr.msra.gmra.mrb[12].mxu0 %vm441_vm7, %v317_v11 }
 0x687   : > { %v1539_v12 = vpop.f32.mrb[12].mxu0 }
 0x688   : > { %v1265_v42 = vadd.f32 %v1539_v12, %v1182_v40  ;;  %v1259_v43 = vpop.f32.mrb[13].mxu0 }
 0x689   : > { %v1260_v45 = vadd.f32 %v1259_v43, %v1178_v38 }
 0x68a   : > { %v1269_v46 = vsub.f32 %v833_v41, %v1265_v42 }
 0x68b   : > { %v1268_v25 = vsub.f32 %v828_v44, %v1260_v45 }
 0x68c   : > { %1673 = vtanh.f32 %v1269_v46 }
 0x68d   : > { %1675 = vtanh.f32 %v1268_v25 }
 0x696   : > { %v1674_v47 = vpop.eup %1673 }
 0x697   : > { %v1676_v48 = vpop.eup %1675  ;;  %1273 = vst [vmem:[%s290_s26 + $0x8] sm:$0xf] %v1674_v47 }
 0x698   : > { %1272 = vst [vmem:[%s290_s26] sm:$0xff] %v1676_v48 }
 0x699   : > { %1746 = shalt.err (!%p1743_p1)
}
 0x69a   : > { %s1747_s28 = scalar_lea.hbm %s2119_s8, 256  ;;  %s1751_s16 = scalar_lea.hbm %s2171_s5, 768 }
 0x69b   : > { %p1748_p5 = scmp.ne.s32.totalorder %s2119_s8, %s1747_s28  ;;  %p1752_p6 = scmp.lt.u32.totalorder %s2119_s8, %s2171_s5 }
 0x69c   : > { %p1753_p10 = scmp.lt.u32.totalorder %s1751_s16, %s1747_s28  ;;  %p1755_p12 = scmp.lt.u32.totalorder %s1747_s28, %s2119_s8 }
 0x69d   : > { %p1749_p0 = pnand %p1748_p5, %p2190_p3 }
 0x69e   : > { %p1754_p11 = por %p1753_p10, %p1752_p6 }
 0x69f   : > { %p1750_p2 = pneg %p1749_p0 }
 0x6a0   : > { %p1756_p4 = por %p1755_p12, %p1754_p11 }
 0x6a2   : > { %p1757_p7 = pnand %p1756_p4, %p1750_p2 }
 0x6a4   : > { %1760 = shalt.err (!%p1757_p7)
}
 0x6a5   : > { %s1819_s23 = smov 128   ;;  %s1820_s26 = smov 384  }
 0x6a6   : > { %s1821_s7 = smov 8  }
 0x6a7   : > { %1592 = dma.vmem_to_hbm [thread:$0]  (%p2190_p3), %s2121_s6, 256, %s2119_s8, %s2125_s10, %s1819_s23, %s1820_s26, %s1821_s7  }
 0x6a8 PF: > { %p1609_p8 = scmp.ge.s32.totalorder %s1803_s21, 2  ;;  %s1302_s25 = sand.u32 1, %s1791_s18  }
 0x6a9   : > { %p2191_p9 = scmp.ne.s32.totalorder %s2177_s30, 0  ;;  %s1303_s22 = scalar_lea.sflag [#allocation5], %s1302_s25 }
 0x6ab   : > { %p1602_p13 = pnand %p1609_p8, %p2191_p9 }
 0x6ad   : > { %1786 = dma.done.wait (!%p1602_p13), %s1303_s22, 256  }
 0x6ae   : > { %1788 = vsyncadd (!%p1602_p13), %s1303_s22, 4294967040  ;;  %p17_p1 = scmp.ge.s32.totalorder %s1877_s24, 5   ;;  %s2192_s18 = smov %s1795_s19 }
 0x6af   : > { %s2193_s19 = smov %s1799_s20  ;;  %s2194_s20 = smov %s1889_s27 }
 0x6b0   : > { %s2195_s21 = smov %s1877_s24  ;;  %19 = sbr.rel (!%p17_p1) target bundleno = 5 (0x5), region = 127 }
 0x6b7   :  { %1308 = vsyncpa [#allocation4], 1 }
 0x6b8   :  { %1310 = vsyncpa [#allocation4 + $0x1], 1 }
 0x6b9   :  { %1311 = vsyncpa [#allocation7], 1 }
 0x6ba   :  { %1312 = vsyncpa [#allocation5], 1 }
 0x6bb   :  { %1314 = vsyncpa [#allocation5 + $0x1], 1 }

</bundles_post_ra>
